<compile_context>
chip_gen: v7x
topology: tpu7x:2x2x1
jax: 0.10.0
libtpu: 0.0.40
codegen_flags: <defaults>
</compile_context>

<pallas_src>
import functools

import jax
import jax.numpy as jnp
from jax.experimental import pallas as pl
from jax.experimental.pallas import tpu as pltpu

LANE = 128


def _round_up(x, m):
    return (x + m - 1) // m * m


# ----------------------------------------------------------------------------
# Parameter packing: one lane-padded weight blob + one bias blob.
# ----------------------------------------------------------------------------
def pack_params(params):
    """params = (w0,b0,w1,b1,w2,b2,w3,b3), weights stored (in, out).

    Returns:
      w_blob:  (200 + 3*128, 128) f32 — layer weights stacked on rows,
               each layer zero-padded to 128 output lanes; layers 1-3 also
               zero-padded to 128 input rows (matching the padded activations).
      b_blob:  (8, 128) f32 — row li holds layer li's bias, zero-padded.
      offsets: static ((row_start, n_rows), ...) per layer for in-kernel slicing.
    """
    ws = params[0::2]
    bs = params[1::2]
    dtype = ws[0].dtype
    blocks, offsets, row = [], [], 0
    for li, w in enumerate(ws):
        fin = w.shape[0] if li == 0 else LANE          # 200, 128, 128, 128
        wp = jnp.zeros((fin, LANE), dtype).at[: w.shape[0], : w.shape[1]].set(w)
        blocks.append(wp)
        offsets.append((row, fin))
        row += fin
    w_blob = jnp.concatenate(blocks, axis=0)           # (584, 128)
    b_blob = jnp.zeros((8, LANE), dtype)
    for li, b in enumerate(bs):
        b_blob = b_blob.at[li, : b.shape[1]].set(b.reshape(-1))
    return w_blob, b_blob, tuple(offsets)


# ----------------------------------------------------------------------------
# Kernel: whole 4-layer MLP on one (TB, 200) activation tile.
# ----------------------------------------------------------------------------
def _mlp_kernel(x_ref, w_ref, b_ref, o_ref, *, offsets):
    h = x_ref[...]                                     # (TB, 200) f32
    n_layers = len(offsets)
    for li, (row, fin) in enumerate(offsets):          # static unrolled chain
        w = w_ref[row:row + fin, :]                    # static, 8-aligned slice
        b = b_ref[li:li + 1, :]                        # (1, 128) bias row
        h = jnp.dot(h, w, preferred_element_type=jnp.float32) + b
        if li < n_layers - 1:
            h = jnp.maximum(h, 0.0)                    # ReLU (f32 VPU math)
    o_ref[...] = h.astype(o_ref.dtype)                 # lane-dense (TB,128) store


# ----------------------------------------------------------------------------
# Wrapper: Net.enc_forw (the MLP after the encoder).
# ----------------------------------------------------------------------------
@jax.jit
def qnet_enc_forw(enc_data, params):
    w_blob, b_blob, offsets = pack_params(params)
    n_out = params[6].shape[1]
    B, n_in = enc_data.shape

    # Batch tile: multiple of 8 sublanes, capped so that 2 activation buffers
    # + packed params stay well under VMEM on every chip (incl. v7x 64 MiB/TC).
    TB = min(512, _round_up(B, 8))
    B_pad = _round_up(B, TB)
    x = enc_data
    if B_pad != B:
        x = jnp.zeros((B_pad, n_in), enc_data.dtype).at[:B].set(enc_data)

    grid = (B_pad // TB,)
    out = pl.pallas_call(
        functools.partial(_mlp_kernel, offsets=offsets),
        out_shape=jax.ShapeDtypeStruct((B_pad, LANE), jnp.float32),
        grid=grid,
        in_specs=[
            # activation tile marches over the batch (auto double-buffered)
            pl.BlockSpec((TB, n_in), lambda i: (i, 0)),
            # packed params: constant block index -> stays VMEM-resident
            pl.BlockSpec(w_blob.shape, lambda i: (0, 0)),
            pl.BlockSpec(b_blob.shape, lambda i: (0, 0)),
        ],
        out_specs=pl.BlockSpec((TB, LANE), lambda i: (i, 0)),
        compiler_params=pltpu.CompilerParams(
            dimension_semantics=("parallel",)),       # shard batch across TCs
    )(x, w_blob, b_blob)
    return out[:B, :n_out]


def qnet_forward(data, temperature, params, encoder):
    """Net.forward: encoder -> MLP, returns (out, qy=0)."""
    del temperature  # unused in reference forward (qy hard-coded 0)
    # TODO(synk): `encoder` is an external module passed to Net.__init__; if it
    # were plain JAX math it could be fused into the same pallas_call to avoid
    # the HBM round-trip of the (B, 200) encoding.
    enc = encoder(data, 50, 50)
    out = qnet_enc_forw(enc, params)
    qy = 0
    return out, qy


def init_params(key, n_hidden_nodes, n_outputs, bias=True, dtype=jnp.float32):
    """nn.Linear-shaped params: 200->H, H->H/2, H/2->H/4, H/4->n_out,
       stored (in, out) so the kernel computes x @ W == PyTorch x @ W.T."""
    dims = [200, n_hidden_nodes, n_hidden_nodes // 2, n_hidden_nodes // 4, n_outputs]
    params = []
    for i in range(4):
        key, kw, kb = jax.random.split(key, 3)
        fan_in, fan_out = dims[i], dims[i + 1]
        bound = 1.0 / (fan_in ** 0.5)
        w = jax.random.uniform(kw, (fan_in, fan_out), dtype, -bound, bound)
        if bias:
            b = jax.random.uniform(kb, (1, fan_out), dtype, -bound, bound)
        else:
            b = jnp.zeros((1, fan_out), dtype)
        params += [w, b]
    return tuple(params)


if __name__ == "__main__":
    key = jax.random.PRNGKey(0)

    B = 2                 # batch
    n_hidden_nodes = 32   # hidden dims 32, 16, 8
    n_outputs = 4

    k_params, k_data = jax.random.split(key)
    params = init_params(k_params, n_hidden_nodes, n_outputs, bias=True)

    # Encoder is external to Net; stand-in yields the 200-dim encoding directly.
    def encoder(data, a, b):
        del a, b
        return data

    data = jax.random.normal(k_data, (B, 200), jnp.float32)

    out, qy = qnet_forward(data, temperature=1.0, params=params, encoder=encoder)
    out = jax.block_until_ready(out)

    # sanity check against plain-JAX reference of the same MLP
    w0, b0, w1, b1, w2, b2, w3, b3 = params
    ref = jnp.maximum(data @ w0 + b0, 0.0)
    ref = jnp.maximum(ref @ w1 + b1, 0.0)
    ref = jnp.maximum(ref @ w2 + b2, 0.0)
    ref = ref @ w3 + b3

    assert out.shape == (B, n_outputs)
    assert qy == 0
    assert jnp.allclose(out, ref, atol=1e-5, rtol=1e-5)

    print("KERNEL_OK")
</pallas_src>

<mosaic_0001>
module attributes {stable_mosaic.version = 11 : i64} {
  func.func @_mlp_kernel(%arg0: i32, %arg1: memref<8x200xf32, #tpu.memory_space<vmem>>, %arg2: memref<584x128xf32, #tpu.memory_space<vmem>>, %arg3: memref<8x128xf32, #tpu.memory_space<vmem>>, %arg4: memref<8x128xf32, #tpu.memory_space<vmem>>) attributes {dimension_semantics = [#tpu.dimension_semantics<parallel>], iteration_bounds = array<i64: 1>, scalar_prefetch = 0 : i64, scratch_operands = 0 : i64, tpu.core_type = #tpu.core_type<tc>, window_params = [{transform_indices = @transform_0, window_bounds = array<i64: 8, 200>}, {pipeline_mode = #tpu.pipeline_mode<synchronous>, transform_indices = @transform_1, window_bounds = array<i64: 584, 128>}, {pipeline_mode = #tpu.pipeline_mode<synchronous>, transform_indices = @transform_2, window_bounds = array<i64: 8, 128>}, {transform_indices = @transform_3, window_bounds = array<i64: 8, 128>}]} {
    %c0 = arith.constant 0 : index
    %c0_0 = arith.constant 0 : index
    %0 = vector.load %arg1[%c0, %c0_0] : memref<8x200xf32, #tpu.memory_space<vmem>>, vector<8x200xf32>
    %c0_1 = arith.constant 0 : index
    %c0_2 = arith.constant 0 : index
    %1 = vector.load %arg2[%c0_1, %c0_2] : memref<584x128xf32, #tpu.memory_space<vmem>>, vector<200x128xf32>
    %c0_3 = arith.constant 0 : index
    %c0_4 = arith.constant 0 : index
    %2 = vector.load %arg3[%c0_3, %c0_4] : memref<8x128xf32, #tpu.memory_space<vmem>>, vector<1x128xf32>
    %cst = arith.constant dense<0.000000e+00> : vector<8x128xf32>
    %3 = tpu.matmul %0, %1, %cst {dimension_numbers = #tpu.dot_dimension_numbers<[1], [0], [0], [1], [0, 0, 1, 1], [], []>} : vector<8x200xf32>, vector<200x128xf32>, vector<8x128xf32> -> vector<8x128xf32>
    %4 = vector.broadcast %2 : vector<1x128xf32> to vector<8x128xf32>
    %5 = arith.addf %3, %4 : vector<8x128xf32>
    %cst_5 = arith.constant 0.000000e+00 : f32
    %6 = vector.broadcast %cst_5 : f32 to vector<8x128xf32>
    %7 = arith.maximumf %5, %6 : vector<8x128xf32>
    %c200 = arith.constant 200 : index
    %c0_6 = arith.constant 0 : index
    %8 = vector.load %arg2[%c200, %c0_6] : memref<584x128xf32, #tpu.memory_space<vmem>>, vector<128x128xf32>
    %c1 = arith.constant 1 : index
    %c0_7 = arith.constant 0 : index
    %9 = vector.load %arg3[%c1, %c0_7] : memref<8x128xf32, #tpu.memory_space<vmem>>, vector<1x128xf32>
    %cst_8 = arith.constant dense<0.000000e+00> : vector<8x128xf32>
    %10 = tpu.matmul %7, %8, %cst_8 {dimension_numbers = #tpu.dot_dimension_numbers<[1], [0], [0], [1], [0, 0, 1, 1], [], []>} : vector<8x128xf32>, vector<128x128xf32>, vector<8x128xf32> -> vector<8x128xf32>
    %11 = vector.broadcast %9 : vector<1x128xf32> to vector<8x128xf32>
    %12 = arith.addf %10, %11 : vector<8x128xf32>
    %cst_9 = arith.constant 0.000000e+00 : f32
    %13 = vector.broadcast %cst_9 : f32 to vector<8x128xf32>
    %14 = arith.maximumf %12, %13 : vector<8x128xf32>
    %c328 = arith.constant 328 : index
    %c0_10 = arith.constant 0 : index
    %15 = vector.load %arg2[%c328, %c0_10] : memref<584x128xf32, #tpu.memory_space<vmem>>, vector<128x128xf32>
    %c2 = arith.constant 2 : index
    %c0_11 = arith.constant 0 : index
    %16 = vector.load %arg3[%c2, %c0_11] : memref<8x128xf32, #tpu.memory_space<vmem>>, vector<1x128xf32>
    %cst_12 = arith.constant dense<0.000000e+00> : vector<8x128xf32>
    %17 = tpu.matmul %14, %15, %cst_12 {dimension_numbers = #tpu.dot_dimension_numbers<[1], [0], [0], [1], [0, 0, 1, 1], [], []>} : vector<8x128xf32>, vector<128x128xf32>, vector<8x128xf32> -> vector<8x128xf32>
    %18 = vector.broadcast %16 : vector<1x128xf32> to vector<8x128xf32>
    %19 = arith.addf %17, %18 : vector<8x128xf32>
    %cst_13 = arith.constant 0.000000e+00 : f32
    %20 = vector.broadcast %cst_13 : f32 to vector<8x128xf32>
    %21 = arith.maximumf %19, %20 : vector<8x128xf32>
    %c456 = arith.constant 456 : index
    %c0_14 = arith.constant 0 : index
    %22 = vector.load %arg2[%c456, %c0_14] : memref<584x128xf32, #tpu.memory_space<vmem>>, vector<128x128xf32>
    %c3 = arith.constant 3 : index
    %c0_15 = arith.constant 0 : index
    %23 = vector.load %arg3[%c3, %c0_15] : memref<8x128xf32, #tpu.memory_space<vmem>>, vector<1x128xf32>
    %cst_16 = arith.constant dense<0.000000e+00> : vector<8x128xf32>
    %24 = tpu.matmul %21, %22, %cst_16 {dimension_numbers = #tpu.dot_dimension_numbers<[1], [0], [0], [1], [0, 0, 1, 1], [], []>} : vector<8x128xf32>, vector<128x128xf32>, vector<8x128xf32> -> vector<8x128xf32>
    %25 = vector.broadcast %23 : vector<1x128xf32> to vector<8x128xf32>
    %26 = arith.addf %24, %25 : vector<8x128xf32>
    %c0_17 = arith.constant 0 : index
    %c0_18 = arith.constant 0 : index
    %27 = vector.load %arg4[%c0_17, %c0_18] : memref<8x128xf32, #tpu.memory_space<vmem>>, vector<8x128xf32>
    tpu.vector_store %arg4[%c0_17, %c0_18], %26 {strides = array<i32>} : memref<8x128xf32, #tpu.memory_space<vmem>>, vector<8x128xf32>,
    return
  }
  func.func @transform_0(%arg0: i32) -> (i32, i32) {
    %c0_i32 = arith.constant 0 : i32
    %c0_i32_0 = arith.constant 0 : i32
    return %arg0, %c0_i32 : i32, i32
  }
  func.func @transform_1(%arg0: i32) -> (i32, i32) {
    %c0_i32 = arith.constant 0 : i32
    %c0_i32_0 = arith.constant 0 : i32
    %c0_i32_1 = arith.constant 0 : i32
    return %c0_i32, %c0_i32_0 : i32, i32
  }
  func.func @transform_2(%arg0: i32) -> (i32, i32) {
    %c0_i32 = arith.constant 0 : i32
    %c0_i32_0 = arith.constant 0 : i32
    %c0_i32_1 = arith.constant 0 : i32
    return %c0_i32, %c0_i32_0 : i32, i32
  }
  func.func @transform_3(%arg0: i32) -> (i32, i32) {
    %c0_i32 = arith.constant 0 : i32
    %c0_i32_0 = arith.constant 0 : i32
    return %arg0, %c0_i32 : i32, i32
  }
}

</mosaic_0001>

<bundles_post_ra>
// kernel: qnet_enc_forw.1
= control target key start
LH: loop header
LB: loop body
LE: loop exit
PB: predicated region body
PF: predicated region fallthrough
CT: control target
= control target key end

     0   :  { %v673_v0 = vmov 0.0|0.0   ;;  %vm46_vm0 = vcmask 588800   ;;  %v674_v59 = vmov 0.0   ;;  %vm675_vm1 = vmmov 0   ;;  %s975_s1 = inlined_call_operand.vmem [shape: f32[584,128], index: 1, kind: input, shape index: {}]   ;;  %s976_s0 = inlined_call_operand.vmem [shape: f32[8,200], index: 0, kind: input, shape index: {}]   ;;  %s977_s2 = inlined_call_operand.vmem [shape: f32[8,128], index: 2, kind: input, shape index: {}]   ;;  %s978_s3 = inlined_call_operand.vmem [shape: f32[8,128], index: 3, kind: output, shape index: {}]  }
   0x1   :  { %562 = vmatprep.subr.bf16.mxu0 %v673_v0  ;;  %v16_v1 = vld [vmem:[%s975_s1] sm:$0xff]  ;;  %v17_v2 = vld [vmem:[%s975_s1 + $0x8] sm:$0xff]  ;;  %v18_v3 = vld [vmem:[%s975_s1 + $0x10] sm:$0xff]  ;;  %598 = vmatprep.subr.bf16.mxu1 %v673_v0 }
   0x2   :  { %v563_v4 = vpack.c.bf16 %v17_v2, %v16_v1  ;;  %v19_v5 = vld [vmem:[%s975_s1 + $0x18] sm:$0xff]  ;;  %v20_v7 = vld [vmem:[%s975_s1 + $0x20] sm:$0xff]  ;;  %v21_v8 = vld [vmem:[%s975_s1 + $0x28] sm:$0xff]  ;;  %489 = vmatprep.mubr.msk.f32.mxu1 %vm675_vm1, %v674_v59 }
   0x3   :  { %v566_v6 = vpack.c.bf16 %v19_v5, %v18_v3  ;;  %v569_v9 = vpack.c.bf16 %v21_v8, %v20_v7  ;;  %v22_v10 = vld [vmem:[%s975_s1 + $0x30] sm:$0xff]  ;;  %v23_v11 = vld [vmem:[%s975_s1 + $0x38] sm:$0xff]  ;;  %v15_v12 = vld [vmem:[%s976_s0 + $0x8] sm:$0xff] }
   0x4   :  { %564 = vmatpush1.bf16.msra.mxu0 %v563_v4  ;;  %402 = vmatprep.mubr.msk.f32.mxu0 %vm46_vm0, %v15_v12  ;;  %v121_v13 = vld [vmem:[%s975_s1 + $0xc8] sm:$0xff]  ;;  %v122_v14 = vld [vmem:[%s975_s1 + $0xd0] sm:$0xff]  ;;  %v123_v15 = vld [vmem:[%s975_s1 + $0xd8] sm:$0xff]  ;;  %v572_v18 = vpack.c.bf16 %v23_v11, %v22_v10 }
   0x5   :  { %565 = vmatprep.subr.bf16.mxu0 %v673_v0  ;;  %v599_v16 = vpack.c.bf16 %v122_v14, %v121_v13  ;;  %v124_v17 = vld [vmem:[%s975_s1 + $0xe0] sm:$0xff]  ;;  %v25_v20 = vld [vmem:[%s975_s1 + $0x48] sm:$0xff]  ;;  %v126_v23 = vld [vmem:[%s975_s1 + $0xf0] sm:$0xff] }
   0x6   :  { %v24_v19 = vld [vmem:[%s975_s1 + $0x40] sm:$0xff]  ;;  %v602_v21 = vpack.c.bf16 %v124_v17, %v123_v15  ;;  %v125_v22 = vld [vmem:[%s975_s1 + $0xe8] sm:$0xff]  ;;  %v26_v25 = vld [vmem:[%s975_s1 + $0x50] sm:$0xff] }
   0x7   :  { %600 = vmatpush3.bf16.msra.mxu1 %v599_v16  ;;  %v575_v24 = vpack.c.bf16 %v25_v20, %v24_v19  ;;  %v27_v26 = vld [vmem:[%s975_s1 + $0x58] sm:$0xff]  ;;  %v605_v27 = vpack.c.bf16 %v126_v23, %v125_v22  ;;  %v128_v29 = vld [vmem:[%s975_s1 + $0x100] sm:$0xff]  ;;  %v29_v32 = vld [vmem:[%s975_s1 + $0x68] sm:$0xff] }
   0x8   :  { %567 = vmatpush1.bf16.msra.mxu0 %v566_v6  ;;  %601 = vmatprep.subr.bf16.mxu1 %v673_v0  ;;  %v127_v28 = vld [vmem:[%s975_s1 + $0xf8] sm:$0xff]  ;;  %v578_v30 = vpack.c.bf16 %v27_v26, %v26_v25  ;;  %v28_v31 = vld [vmem:[%s975_s1 + $0x60] sm:$0xff]  ;;  %v129_v34 = vld [vmem:[%s975_s1 + $0x108] sm:$0xff] }
   0x9   :  { %568 = vmatprep.subr.bf16.mxu0 %v673_v0  ;;  %v608_v33 = vpack.c.bf16 %v128_v29, %v127_v28  ;;  %v130_v35 = vld [vmem:[%s975_s1 + $0x110] sm:$0xff]  ;;  %v581_v36 = vpack.c.bf16 %v29_v32, %v28_v31  ;;  %v31_v38 = vld [vmem:[%s975_s1 + $0x78] sm:$0xff]  ;;  %v132_v41 = vld [vmem:[%s975_s1 + $0x120] sm:$0xff] }
   0xa   :  { %v30_v37 = vld [vmem:[%s975_s1 + $0x70] sm:$0xff]  ;;  %v611_v39 = vpack.c.bf16 %v130_v35, %v129_v34  ;;  %v131_v40 = vld [vmem:[%s975_s1 + $0x118] sm:$0xff]  ;;  %v32_v43 = vld [vmem:[%s975_s1 + $0x80] sm:$0xff] }
   0xb   :  { %603 = vmatpush3.bf16.msra.mxu1 %v602_v21  ;;  %v584_v42 = vpack.c.bf16 %v31_v38, %v30_v37  ;;  %v33_v44 = vld [vmem:[%s975_s1 + $0x88] sm:$0xff]  ;;  %v614_v45 = vpack.c.bf16 %v132_v41, %v131_v40  ;;  %v134_v47 = vld [vmem:[%s975_s1 + $0x130] sm:$0xff]  ;;  %v35_v50 = vld [vmem:[%s975_s1 + $0x98] sm:$0xff] }
   0xc   :  { %570 = vmatpush1.bf16.msra.mxu0 %v569_v9  ;;  %604 = vmatprep.subr.bf16.mxu1 %v673_v0  ;;  %v133_v46 = vld [vmem:[%s975_s1 + $0x128] sm:$0xff]  ;;  %v587_v48 = vpack.c.bf16 %v33_v44, %v32_v43  ;;  %v34_v49 = vld [vmem:[%s975_s1 + $0x90] sm:$0xff]  ;;  %v36_v53 = vld [vmem:[%s975_s1 + $0xa0] sm:$0xff] }
   0xd   :  { %571 = vmatprep.subr.bf16.mxu0 %v673_v0  ;;  %v617_v51 = vpack.c.bf16 %v134_v47, %v133_v46  ;;  %v590_v52 = vpack.c.bf16 %v35_v50, %v34_v49  ;;  %v37_v54 = vld [vmem:[%s975_s1 + $0xa8] sm:$0xff]  ;;  %v38_v56 = vld [vmem:[%s975_s1 + $0xb0] sm:$0xff]  ;;  %v39_v57 = vld [vmem:[%s975_s1 + $0xb8] sm:$0xff] }
   0xe   :  { %v593_v55 = vpack.c.bf16 %v37_v54, %v36_v53  ;;  %v596_v58 = vpack.c.bf16 %v39_v57, %v38_v56  ;;  %v40_v60 = vld [vmem:[%s975_s1 + $0xc0] sm:$0xff]  ;;  %v135_v62 = vld [vmem:[%s975_s1 + $0x138] sm:$0xff]  ;;  %v213_v3 = vld [vmem:[%s975_s1 + $0x148] sm:$0xff] }
   0xf   :  { %606 = vmatpush3.bf16.msra.mxu1 %v605_v27  ;;  %v14_v61 = vld [vmem:[%s976_s0] sm:$0xff]  ;;  %v214_v4 = vld [vmem:[%s975_s1 + $0x150] sm:$0xff]  ;;  %v215_v10 = vld [vmem:[%s975_s1 + $0x158] sm:$0xff] }
  0x10   :  { %573 = vmatpush1.bf16.msra.mxu0 %v572_v18  ;;  %607 = vmatprep.subr.bf16.mxu1 %v673_v0  ;;  %v136_v63 = vld [vmem:[%s975_s1 + $0x140] sm:$0xff]  ;;  %v623_v8 = vpack.c.bf16 %v214_v4, %v213_v3  ;;  %v217_v13 = vld [vmem:[%s975_s1 + $0x168] sm:$0xff]  ;;  %v218_v14 = vld [vmem:[%s975_s1 + $0x170] sm:$0xff] }
  0x11   :  { %574 = vmatprep.subr.bf16.mxu0 %v673_v0  ;;  %v620_v1 = vpack.c.bf16 %v136_v63, %v135_v62  ;;  %v401_v2 = vld [vmem:[%s977_s2] ss:$0 sm:$0xff]  ;;  %v629_v15 = vpack.c.bf16 %v218_v14, %v217_v13  ;;  %v219_v16 = vld [vmem:[%s975_s1 + $0x178] sm:$0xff]  ;;  %v221_v19 = vld [vmem:[%s975_s1 + $0x188] sm:$0xff] }
  0x12   :  { %v216_v11 = vld [vmem:[%s975_s1 + $0x160] sm:$0xff]  ;;  %v222_v20 = vld [vmem:[%s975_s1 + $0x190] sm:$0xff]  ;;  %v223_v22 = vld [vmem:[%s975_s1 + $0x198] sm:$0xff] }
  0x13   :  { %609 = vmatpush3.bf16.msra.mxu1 %v608_v33  ;;  %v626_v12 = vpack.c.bf16 %v216_v11, %v215_v10  ;;  %v220_v17 = vld [vmem:[%s975_s1 + $0x180] sm:$0xff]  ;;  %v635_v21 = vpack.c.bf16 %v222_v20, %v221_v19  ;;  %v225_v25 = vld [vmem:[%s975_s1 + $0x1a8] sm:$0xff]  ;;  %v226_v26 = vld [vmem:[%s975_s1 + $0x1b0] sm:$0xff] }
  0x14   :  { %576 = vmatpush1.bf16.msra.mxu0 %v575_v24  ;;  %610 = vmatprep.subr.bf16.mxu1 %v673_v0  ;;  %v632_v18 = vpack.c.bf16 %v220_v17, %v219_v16  ;;  %v224_v23 = vld [vmem:[%s975_s1 + $0x1a0] sm:$0xff]  ;;  %v641_v27 = vpack.c.bf16 %v226_v26, %v225_v25  ;;  %v227_v28 = vld [vmem:[%s975_s1 + $0x1b8] sm:$0xff]  ;;  %v305_v31 = vld [vmem:[%s975_s1 + $0x1c8] sm:$0xff] }
  0x15   :  { %577 = vmatprep.subr.bf16.mxu0 %v673_v0  ;;  %v638_v24 = vpack.c.bf16 %v224_v23, %v223_v22  ;;  %v228_v29 = vld [vmem:[%s975_s1 + $0x1c0] sm:$0xff]  ;;  %v306_v32 = vld [vmem:[%s975_s1 + $0x1d0] sm:$0xff]  ;;  %v307_v33 = vld [vmem:[%s975_s1 + $0x1d8] sm:$0xff] }
  0x16   :  { %v647_v34 = vpack.c.bf16 %v306_v32, %v305_v31  ;;  %v308_v35 = vld [vmem:[%s975_s1 + $0x1e0] sm:$0xff]  ;;  %v309_v37 = vld [vmem:[%s975_s1 + $0x1e8] sm:$0xff]  ;;  %v310_v38 = vld [vmem:[%s975_s1 + $0x1f0] sm:$0xff] }
  0x17   :  { %612 = vmatpush3.bf16.msra.mxu1 %v611_v39  ;;  %v653_v39 = vpack.c.bf16 %v310_v38, %v309_v37  ;;  %v311_v40 = vld [vmem:[%s975_s1 + $0x1f8] sm:$0xff]  ;;  %v312_v41 = vld [vmem:[%s975_s1 + $0x200] sm:$0xff]  ;;  %v313_v43 = vld [vmem:[%s975_s1 + $0x208] sm:$0xff] }
  0x18   :  { %579 = vmatpush1.bf16.msra.mxu0 %v578_v30  ;;  %613 = vmatprep.subr.bf16.mxu1 %v673_v0  ;;  %v644_v30 = vpack.c.bf16 %v228_v29, %v227_v28  ;;  %v314_v44 = vld [vmem:[%s975_s1 + $0x210] sm:$0xff]  ;;  %v315_v46 = vld [vmem:[%s975_s1 + $0x218] sm:$0xff]  ;;  %v316_v47 = vld [vmem:[%s975_s1 + $0x220] sm:$0xff] }
  0x19   :  { %580 = vmatprep.subr.bf16.mxu0 %v673_v0  ;;  %v317_v49 = vld [vmem:[%s975_s1 + $0x228] sm:$0xff]  ;;  %v318_v50 = vld [vmem:[%s975_s1 + $0x230] sm:$0xff]  ;;  %v319_v57 = vld [vmem:[%s975_s1 + $0x238] sm:$0xff] }
  0x1b   :  { %615 = vmatpush3.bf16.msra.mxu1 %v614_v45  ;;  %v659_v45 = vpack.c.bf16 %v314_v44, %v313_v43 }
  0x1c   :  { %582 = vmatpush1.bf16.msra.mxu0 %v581_v36  ;;  %616 = vmatprep.subr.bf16.mxu1 %v673_v0  ;;  %v650_v36 = vpack.c.bf16 %v308_v35, %v307_v33 }
  0x1d   :  { %583 = vmatprep.subr.bf16.mxu0 %v673_v0 }
  0x1f   :  { %618 = vmatpush3.bf16.msra.mxu1 %v617_v51  ;;  %v665_v51 = vpack.c.bf16 %v318_v50, %v317_v49 }
  0x20   :  { %585 = vmatpush1.bf16.msra.mxu0 %v584_v42  ;;  %619 = vmatprep.subr.bf16.mxu1 %v673_v0  ;;  %v656_v42 = vpack.c.bf16 %v312_v41, %v311_v40 }
  0x21   :  { %586 = vmatprep.subr.bf16.mxu0 %v673_v0 }
  0x23   :  { %621 = vmatpush3.bf16.msra.mxu1 %v620_v1  ;;  %v405_v1 = vld [vmem:[%s977_s2 + $0x3] ss:$0 sm:$0xff] }
  0x24   :  { %588 = vmatpush1.bf16.msra.mxu0 %v587_v48  ;;  %622 = vmatprep.subr.bf16.mxu1 %v673_v0  ;;  %v662_v48 = vpack.c.bf16 %v316_v47, %v315_v46 }
  0x25   :  { %589 = vmatprep.subr.bf16.mxu0 %v673_v0 }
  0x28   :  { %591 = vmatpush1.bf16.msra.mxu0 %v590_v52  ;;  %v403_v52 = vld [vmem:[%s977_s2 + $0x1] ss:$0 sm:$0xff] }
  0x29   :  { %592 = vmatprep.subr.bf16.mxu0 %v673_v0 }
  0x2c   :  { %594 = vmatpush1.bf16.msra.mxu0 %v593_v55 }
  0x2d   :  { %595 = vmatprep.subr.bf16.mxu0 %v673_v0 }
  0x30   :  { %597 = vmatpush1.bf16.msra.mxu0 %v596_v58  ;;  %v320_v58 = vld [vmem:[%s975_s1 + $0x240] sm:$0xff] }
  0x31   :  { %98 = vmatprep.subr.mxu0 %v674_v59 }
  0x34   :  { %99 = vmatpush1.msra.mxu0 %v40_v60 }
  0x35   :  { %115 = vmatmul.mubr.f32.vlgmr.msra.gmra.mrb[0].mxu0 %v14_v61  ;;  %646 = vmatprep.subr.bf16.mxu0 %v673_v0 }
  0x36   :  { %559 = vmatprep.mubr.msk.f32.mxu0 %vm675_vm1, %v674_v59  ;;  %648 = vmatpush3.bf16.msra.mxu0 %v647_v34 }
  0x37   :  { %649 = vmatprep.subr.bf16.mxu0 %v673_v0 }
  0x3a   :  { %651 = vmatpush3.bf16.msra.mxu0 %v650_v36 }
  0x3b   :  { %652 = vmatprep.subr.bf16.mxu0 %v673_v0 }
  0x3e   :  { %654 = vmatpush3.bf16.msra.mxu0 %v653_v39 }
  0x3f   :  { %655 = vmatprep.subr.bf16.mxu0 %v673_v0 }
  0x42   :  { %657 = vmatpush3.bf16.msra.mxu0 %v656_v42 }
  0x43   :  { %658 = vmatprep.subr.bf16.mxu0 %v673_v0 }
  0x46   :  { %660 = vmatpush3.bf16.msra.mxu0 %v659_v45 }
  0x47   :  { %661 = vmatprep.subr.bf16.mxu0 %v673_v0 }
  0x4a   :  { %663 = vmatpush3.bf16.msra.mxu0 %v662_v48 }
  0x4b   :  { %664 = vmatprep.subr.bf16.mxu0 %v673_v0 }
  0x4e   :  { %666 = vmatpush3.bf16.msra.mxu0 %v665_v51 }
  0x4f   :  { %667 = vmatprep.subr.bf16.mxu0 %v673_v0 }
 0x108   :  { %v116_v5 = vpop.f32.mrb[0].mxu0 }
 0x109   :  { %v117_v6 = vadd.f32 %v401_v2, %v116_v5  ;;  %v118_v7 = vpop.f32.mrb[1].mxu0 }
 0x10b   :  { %v120_v9 = vmax.f32 %v117_v6, 0.0 }
 0x10d   :  { %490 = vmatmul.mubr.f32.vlgmr.msra.gmra.mrb[0].mxu1 %v120_v9 }
 0x10e   :  { %624 = vmatpush3.bf16.msra.mxu1 %v623_v8  ;;  %524 = vmatprep.mubr.msk.f32.mxu1 %vm675_vm1, %v674_v59  ;;  %v668_v59 = vpack.c.bf16 %v320_v58, %v319_v57 }
 0x10f   :  { %625 = vmatprep.subr.bf16.mxu1 %v673_v0 }
 0x110   :  { %669 = vmatpush3.bf16.msra.mxu0 %v668_v59 }
 0x112   :  { %627 = vmatpush3.bf16.msra.mxu1 %v626_v12 }
 0x113   :  { %628 = vmatprep.subr.bf16.mxu1 %v673_v0 }
 0x116   :  { %630 = vmatpush3.bf16.msra.mxu1 %v629_v15 }
 0x117   :  { %631 = vmatprep.subr.bf16.mxu1 %v673_v0 }
 0x11a   :  { %633 = vmatpush3.bf16.msra.mxu1 %v632_v18 }
 0x11b   :  { %634 = vmatprep.subr.bf16.mxu1 %v673_v0 }
 0x11e   :  { %636 = vmatpush3.bf16.msra.mxu1 %v635_v21 }
 0x11f   :  { %637 = vmatprep.subr.bf16.mxu1 %v673_v0 }
 0x122   :  { %639 = vmatpush3.bf16.msra.mxu1 %v638_v24 }
 0x123   :  { %640 = vmatprep.subr.bf16.mxu1 %v673_v0 }
 0x126   :  { %642 = vmatpush3.bf16.msra.mxu1 %v641_v27 }
 0x127   :  { %643 = vmatprep.subr.bf16.mxu1 %v673_v0  ;;  %v404_v0 = vld [vmem:[%s977_s2 + $0x2] ss:$0 sm:$0xff] }
 0x12a   :  { %645 = vmatpush3.bf16.msra.mxu1 %v644_v30 }
 0x1e0   :  { %v208_v53 = vpop.f32.mrb[0].mxu1 }
 0x1e1   :  { %v209_v54 = vadd.f32 %v403_v52, %v208_v53  ;;  %v491_v55 = vpop.f32.mrb[1].mxu1 }
 0x1e3   :  { %v212_v56 = vmax.f32 %v209_v54, 0.0 }
 0x1e5   :  { %525 = vmatmul.mubr.f32.vlgmr.msra.gmra.mrb[2].mxu1 %v212_v56 }
 0x2b8   :  { %v300_v60 = vpop.f32.mrb[2].mxu1 }
 0x2b9   :  { %v301_v61 = vadd.f32 %v404_v0, %v300_v60  ;;  %v526_v62 = vpop.f32.mrb[3].mxu1 }
 0x2bb   :  { %v304_v63 = vmax.f32 %v301_v61, 0.0 }
 0x2bd   :  { %560 = vmatmul.mubr.f32.vlgmr.msra.gmra.mrb[2].mxu0 %v304_v63 }
 0x390   :  { %v392_v2 = vpop.f32.mrb[2].mxu0 }
 0x391   :  { %v393_v3 = vadd.f32 %v405_v1, %v392_v2  ;;  %v561_v4 = vpop.f32.mrb[3].mxu0 }
 0x393   :  { %396 = vst [vmem:[%s978_s3] sm:$0xff] %v393_v3 }

</bundles_post_ra>
